<compile_context>
chip_gen: v7x
topology: tpu7x:2x2x1
jax: 0.10.0
libtpu: 0.0.40
codegen_flags: <defaults>
</compile_context>

<pallas_src>
import jax
import jax.numpy as jnp
from jax.experimental import pallas as pl
from jax.experimental.pallas import tpu as pltpu


def _logreg_kernel(x_ref, w_ref, b_ref, o_ref):
    # logits = x @ W + b  (f32 operands, f32 accumulation on the MXU)
    logits = jnp.dot(x_ref[...], w_ref[...],
                     preferred_element_type=jnp.float32) + b_ref[...]

    # sigmoid (EUP); output bounded in (0, 1) so exp(s) cannot overflow and no
    # max-subtraction is needed before the softmax exp.
    s = jax.nn.sigmoid(logits)
    e = jnp.exp(s)
    denom = jnp.sum(e, axis=-1, keepdims=True)

    # Exact normalization (tiny [TB, C] tile; rows sum to 1 at f32 precision).
    o_ref[...] = (e / denom).astype(o_ref.dtype)


def logistic_regression(x, w, b, *, tb=1024):
    """x: [B, D] f32, w: [D, C] f32, b: [C] f32 -> [B, C] f32 softmax(sigmoid(xW+b))."""
    B, D = x.shape
    C = w.shape[1]
    b2 = b.reshape(1, C)

    # Batch tile: one block if it fits, else the largest multiple-of-8 tile
    # <= tb (blocks are ~TB*(D+C)*4 bytes each, trivially VMEM-safe).
    if B <= tb:
        TB = B
    else:
        TB = max(8, (tb // 8) * 8)
    grid = (pl.cdiv(B, TB),)

    return pl.pallas_call(
        _logreg_kernel,
        out_shape=jax.ShapeDtypeStruct((B, C), jnp.float32),
        grid_spec=pltpu.PrefetchScalarGridSpec(
            num_scalar_prefetch=0,
            grid=grid,
            in_specs=[
                pl.BlockSpec((TB, D), lambda i: (i, 0)),  # x: streamed over batch
                pl.BlockSpec((D, C), lambda i: (0, 0)),   # W: VMEM-resident
                pl.BlockSpec((1, C), lambda i: (0, 0)),   # b: VMEM-resident
            ],
            out_specs=pl.BlockSpec((TB, C), lambda i: (i, 0)),  # unpadded store
        ),
        compiler_params=pltpu.CompilerParams(
            dimension_semantics=("parallel",),   # shards batch across v7x's 2 TCs when grid >= 2
            vmem_limit_bytes=32 * 1024 * 1024,   # safe on v5e (16 MiB scoped default)
        ),
    )(x, w, b2)


if __name__ == "__main__":
    key = jax.random.PRNGKey(0)
    kx, kw, kb = jax.random.split(key, 3)

    batch = 128
    in_features = 32   # X.shape[1]
    num_classes = 4    # len(y.unique())

    x = jax.random.normal(kx, (batch, in_features), dtype=jnp.float32)
    # Deterministic Linear params (Kaiming-uniform-ish scale, like torch default)
    bound = 1.0 / jnp.sqrt(in_features)
    w = jax.random.uniform(kw, (in_features, num_classes), jnp.float32, -bound, bound)
    b = jax.random.uniform(kb, (num_classes,), jnp.float32, -bound, bound)

    # B=128 <= tb -> single block, grid=(1,): no per-step overhead for the demo
    out = logistic_regression(x, w, b)
    jax.block_until_ready(out)

    # Reference (pure JAX, f32): softmax(sigmoid(x @ W + b), axis=1)
    ref = jax.nn.softmax(jax.nn.sigmoid(x @ w + b[None, :]), axis=-1)

    assert out.shape == (batch, num_classes)
    assert jnp.allclose(jnp.sum(out, axis=1), 1.0, atol=1e-5)
    assert jnp.allclose(out, ref, atol=1e-5, rtol=1e-5)
    print("KERNEL_OK")
</pallas_src>

<mosaic_0001>
module attributes {stable_mosaic.version = 11 : i64} {
  func.func @_logreg_kernel(%arg0: i32, %arg1: memref<128x32xf32, #tpu.memory_space<vmem>>, %arg2: memref<32x4xf32, #tpu.memory_space<vmem>>, %arg3: memref<1x4xf32, #tpu.memory_space<vmem>>, %arg4: memref<128x4xf32, #tpu.memory_space<vmem>>) attributes {dimension_semantics = [#tpu.dimension_semantics<parallel>], iteration_bounds = array<i64: 1>, scalar_prefetch = 0 : i64, scratch_operands = 0 : i64, tpu.core_type = #tpu.core_type<tc>, window_params = [{transform_indices = @transform_0, window_bounds = array<i64: 128, 32>}, {pipeline_mode = #tpu.pipeline_mode<synchronous>, transform_indices = @transform_1, window_bounds = array<i64: 32, 4>}, {pipeline_mode = #tpu.pipeline_mode<synchronous>, transform_indices = @transform_2, window_bounds = array<i64: 1, 4>}, {transform_indices = @transform_3, window_bounds = array<i64: 128, 4>}]} {
    %c0 = arith.constant 0 : index
    %c0_0 = arith.constant 0 : index
    %0 = vector.load %arg1[%c0, %c0_0] : memref<128x32xf32, #tpu.memory_space<vmem>>, vector<128x32xf32>
    %c0_1 = arith.constant 0 : index
    %c0_2 = arith.constant 0 : index
    %1 = vector.load %arg2[%c0_1, %c0_2] : memref<32x4xf32, #tpu.memory_space<vmem>>, vector<32x4xf32>
    %cst = arith.constant dense<0.000000e+00> : vector<128x4xf32>
    %2 = tpu.matmul %0, %1, %cst {dimension_numbers = #tpu.dot_dimension_numbers<[1], [0], [0], [1], [0, 0, 1, 1], [], []>} : vector<128x32xf32>, vector<32x4xf32>, vector<128x4xf32> -> vector<128x4xf32>
    %c0_3 = arith.constant 0 : index
    %c0_4 = arith.constant 0 : index
    %3 = vector.load %arg3[%c0_3, %c0_4] : memref<1x4xf32, #tpu.memory_space<vmem>>, vector<1x4xf32>
    %4 = vector.broadcast %3 : vector<1x4xf32> to vector<128x4xf32>
    %5 = arith.addf %2, %4 : vector<128x4xf32>
    %6 = arith.negf %5 : vector<128x4xf32>
    %7 = math.exp %6 : vector<128x4xf32>
    %cst_5 = arith.constant 1.000000e+00 : f32
    %8 = vector.broadcast %cst_5 : f32 to vector<128x4xf32>
    %9 = arith.addf %8, %7 : vector<128x4xf32>
    %10 = arith.divf %8, %9 : vector<128x4xf32>
    %11 = math.exp %10 : vector<128x4xf32>
    %cst_6 = arith.constant dense<0.000000e+00> : vector<128xf32>
    %12 = vector.multi_reduction <add>, %11, %cst_6 [1] : vector<128x4xf32> to vector<128xf32>
    %13 = vector.shape_cast %12 : vector<128xf32> to vector<128x1xf32>
    %14 = vector.broadcast %13 : vector<128x1xf32> to vector<128x4xf32>
    %15 = arith.divf %11, %14 : vector<128x4xf32>
    %c0_7 = arith.constant 0 : index
    %c0_8 = arith.constant 0 : index
    %16 = vector.load %arg4[%c0_7, %c0_8] : memref<128x4xf32, #tpu.memory_space<vmem>>, vector<128x4xf32>
    tpu.vector_store %arg4[%c0_7, %c0_8], %15 {strides = array<i32>} : memref<128x4xf32, #tpu.memory_space<vmem>>, vector<128x4xf32>,
    return
  }
  func.func @transform_0(%arg0: i32) -> (i32, i32) {
    %c0_i32 = arith.constant 0 : i32
    %c0_i32_0 = arith.constant 0 : i32
    return %arg0, %c0_i32 : i32, i32
  }
  func.func @transform_1(%arg0: i32) -> (i32, i32) {
    %c0_i32 = arith.constant 0 : i32
    %c0_i32_0 = arith.constant 0 : i32
    %c0_i32_1 = arith.constant 0 : i32
    return %c0_i32, %c0_i32_0 : i32, i32
  }
  func.func @transform_2(%arg0: i32) -> (i32, i32) {
    %c0_i32 = arith.constant 0 : i32
    %c0_i32_0 = arith.constant 0 : i32
    %c0_i32_1 = arith.constant 0 : i32
    return %c0_i32, %c0_i32_0 : i32, i32
  }
  func.func @transform_3(%arg0: i32) -> (i32, i32) {
    %c0_i32 = arith.constant 0 : i32
    %c0_i32_0 = arith.constant 0 : i32
    return %arg0, %c0_i32 : i32, i32
  }
}

</mosaic_0001>

<bundles_post_ra>
// kernel: tpu_custom_call.1
= control target key start
LH: loop header
LB: loop body
LE: loop exit
PB: predicated region body
PF: predicated region fallthrough
CT: control target
= control target key end

     0   :  { %vm41_vm0 = vcmask 261120   ;;  %vm363_vm1 = vcmask 31744   ;;  %s959_s1 = inlined_call_operand.vmem [shape: f32[32,4], index: 1, kind: input, shape index: {}]   ;;  %s960_s0 = inlined_call_operand.vmem [shape: f32[128,32], index: 0, kind: input, shape index: {}]   ;;  %s961_s2 = inlined_call_operand.vmem [shape: f32[1,4], index: 2, kind: input, shape index: {}]   ;;  %s962_s3 = inlined_call_operand.vmem [shape: f32[128,4], index: 3, kind: output, shape index: {}]  }
   0x1   :  { %v30_v0 = vld [vmem:[%s959_s1] sm:$0xff]  ;;  %v31_v1 = vld [vmem:[%s959_s1 + $0x8] sm:$0xff]  ;;  %v32_v2 = vld [vmem:[%s959_s1 + $0x10] sm:$0xff] }
   0x2   :  { %v549_v3 = vpack.c.bf16 %v31_v1, %v30_v0  ;;  %v33_v4 = vld [vmem:[%s959_s1 + $0x18] sm:$0xff]  ;;  %v14_v5 = vld [vmem:[%s960_s0] sm:$0xff]  ;;  %v15_v8 = vld [vmem:[%s960_s0 + $0x8] sm:$0xff] }
   0x3   :  { %v22_v6 = vld [vmem:[%s960_s0 + $0x40] sm:$0xff]  ;;  %v553_v7 = vpack.c.bf16 %v33_v4, %v32_v2  ;;  %525 = vmatprep.mubr.msk.f32.mxu0 %vm41_vm0, %v14_v5  ;;  %v23_v9 = vld [vmem:[%s960_s0 + $0x48] sm:$0xff]  ;;  %v16_v10 = vld [vmem:[%s960_s0 + $0x10] sm:$0xff] }
   0x4   :  { %537 = vmatprep.mubr.msk.f32.mxu1 %vm41_vm0, %v22_v6  ;;  %550 = vmatprep.subr.bf16.mxu0 %v549_v3  ;;  %v24_v11 = vld [vmem:[%s960_s0 + $0x50] sm:$0xff]  ;;  %v17_v12 = vld [vmem:[%s960_s0 + $0x18] sm:$0xff]  ;;  %v18_v14 = vld [vmem:[%s960_s0 + $0x20] sm:$0xff] }
   0x5   :  { %557 = vmatprep.subr.bf16.mxu1 %v549_v3  ;;  %552 = vmatpush3.bf16.msra.mxu0 %v549_v3  ;;  %v25_v13 = vld [vmem:[%s960_s0 + $0x58] sm:$0xff]  ;;  %v26_v15 = vld [vmem:[%s960_s0 + $0x60] sm:$0xff]  ;;  %v19_v16 = vld [vmem:[%s960_s0 + $0x28] sm:$0xff] }
   0x6   :  { %559 = vmatpush3.bf16.msra.mxu1 %v549_v3  ;;  %554 = vmatprep.subr.bf16.mxu0 %v553_v7  ;;  %v27_v17 = vld [vmem:[%s960_s0 + $0x68] sm:$0xff]  ;;  %v20_v18 = vld [vmem:[%s960_s0 + $0x30] sm:$0xff]  ;;  %v21_v20 = vld [vmem:[%s960_s0 + $0x38] sm:$0xff] }
   0x7   :  { %558 = vmatprep.subr.bf16.mxu1 %v553_v7  ;;  %v28_v19 = vld [vmem:[%s960_s0 + $0x70] sm:$0xff]  ;;  %v29_v21 = vld [vmem:[%s960_s0 + $0x78] sm:$0xff]  ;;  %v788_v22 = vld [vmem:[%s961_s2] ss:$0 sm:$0xff] }
   0x9   :  { %556 = vmatpush3.bf16.msra.mxu0 %v553_v7 }
   0xa   :  { %560 = vmatpush3.bf16.msra.mxu1 %v553_v7 }
   0xc   :  { %526 = vmatmul.mubr.msk.f32.vlgmr.msra.gmra.mrb[0].mxu0 %vm41_vm0, %v15_v8 }
   0xd   :  { %538 = vmatmul.mubr.msk.f32.vlgmr.msra.gmra.mrb[0].mxu1 %vm41_vm0, %v23_v9  ;;  %528 = vmatprep.mubr.msk.f32.mxu0 %vm41_vm0, %v16_v10 }
   0xe   :  { %540 = vmatprep.mubr.msk.f32.mxu1 %vm41_vm0, %v24_v11 }
  0x10   :  { %529 = vmatmul.mubr.msk.f32.gmra.mrb[2].mxu0 %vm41_vm0, %v17_v12 }
  0x11   :  { %541 = vmatmul.mubr.msk.f32.gmra.mrb[2].mxu1 %vm41_vm0, %v25_v13  ;;  %531 = vmatprep.mubr.msk.f32.mxu0 %vm41_vm0, %v18_v14 }
  0x12   :  { %543 = vmatprep.mubr.msk.f32.mxu1 %vm41_vm0, %v26_v15 }
  0x14   :  { %532 = vmatmul.mubr.msk.f32.gmra.mrb[4].mxu0 %vm41_vm0, %v19_v16 }
  0x15   :  { %544 = vmatmul.mubr.msk.f32.gmra.mrb[4].mxu1 %vm41_vm0, %v27_v17  ;;  %534 = vmatprep.mubr.msk.f32.mxu0 %vm41_vm0, %v20_v18 }
  0x16   :  { %546 = vmatprep.mubr.msk.f32.mxu1 %vm41_vm0, %v28_v19 }
  0x18   :  { %535 = vmatmul.mubr.msk.f32.gmra.mrb[6].mxu0 %vm41_vm0, %v21_v20 }
  0x19   :  { %547 = vmatmul.mubr.msk.f32.gmra.mrb[6].mxu1 %vm41_vm0, %v29_v21 }
  0xdf   :  { %v527_v23 = vpop.f32.mrb[0].mxu0 }
  0xe0   :  { %v539_v24 = vpop.f32.mrb[0].mxu1  ;;  %v162_v25 = vadd.f32 %v527_v23, %v788_v22  ;;  %v156_v27 = vpop.f32.mrb[1].mxu0 }
  0xe1   :  { %v202_v26 = vadd.f32 %v539_v24, %v788_v22  ;;  %v196_v28 = vpop.f32.mrb[1].mxu1  ;;  %v157_v29 = vadd.f32 %v788_v22, %v156_v27 }
  0xe2   :  { %v197_v30 = vadd.f32 %v788_v22, %v196_v28  ;;  %v482_v31 = vmul.f32 -1.442695, %v162_v25 }
  0xe3   :  { %v490_v32 = vmul.f32 -1.442695, %v202_v26  ;;  %v481_v33 = vmul.f32 -1.442695, %v157_v29  ;;  %v530_v35 = vpop.f32.mrb[2].mxu0 }
  0xe4   :  { %v489_v34 = vmul.f32 -1.442695, %v197_v30  ;;  %v542_v36 = vpop.f32.mrb[2].mxu1  ;;  %561 = vpow2.f32 %v482_v31  ;;  %v172_v37 = vadd.f32 %v530_v35, %v788_v22  ;;  %v166_v38 = vpop.f32.mrb[3].mxu0 }
  0xe5   :  { %v212_v39 = vadd.f32 %v542_v36, %v788_v22  ;;  %v206_v40 = vpop.f32.mrb[3].mxu1  ;;  %563 = vpow2.f32 %v490_v32  ;;  %v167_v41 = vadd.f32 %v788_v22, %v166_v38 }
  0xe6   :  { %v207_v42 = vadd.f32 %v788_v22, %v206_v40  ;;  %565 = vpow2.f32 %v481_v33  ;;  %v484_v43 = vmul.f32 -1.442695, %v172_v37 }
  0xe7   :  { %v492_v44 = vmul.f32 -1.442695, %v212_v39  ;;  %567 = vpow2.f32 %v489_v34  ;;  %v483_v45 = vmul.f32 -1.442695, %v167_v41  ;;  %v533_v47 = vpop.f32.mrb[4].mxu0 }
  0xe8   :  { %v491_v46 = vmul.f32 -1.442695, %v207_v42  ;;  %v545_v48 = vpop.f32.mrb[4].mxu1  ;;  %569 = vpow2.f32 %v484_v43  ;;  %v182_v49 = vadd.f32 %v533_v47, %v788_v22  ;;  %v176_v50 = vpop.f32.mrb[5].mxu0 }
  0xe9   :  { %v222_v51 = vadd.f32 %v545_v48, %v788_v22  ;;  %v216_v52 = vpop.f32.mrb[5].mxu1  ;;  %571 = vpow2.f32 %v483_v45  ;;  %v177_v53 = vadd.f32 %v788_v22, %v176_v50 }
  0xea   :  { %v217_v54 = vadd.f32 %v788_v22, %v216_v52  ;;  %573 = vpow2.f32 %v492_v44  ;;  %v486_v55 = vmul.f32 -1.442695, %v182_v49 }
  0xeb   :  { %v494_v56 = vmul.f32 -1.442695, %v222_v51  ;;  %575 = vpow2.f32 %v491_v46  ;;  %v485_v57 = vmul.f32 -1.442695, %v177_v53  ;;  %v536_v59 = vpop.f32.mrb[6].mxu0 }
  0xec   :  { %v493_v58 = vmul.f32 -1.442695, %v217_v54  ;;  %v802_v60 = vpop.f32.mrb[6].mxu1  ;;  %577 = vpow2.f32 %v486_v55  ;;  %v192_v61 = vadd.f32 %v536_v59, %v788_v22  ;;  %v805_v62 = vpop.f32.mrb[7].mxu0 }
  0xed   :  { %v807_v63 = vpop.f32.mrb[7].mxu1  ;;  %579 = vpow2.f32 %v485_v57  ;;  %v187_v44 = vadd.f32 %v788_v22, %v805_v62  ;;  %v232_v47 = vadd.f32 %v802_v60, %v788_v22 }
  0xee   :  { %v562_v0 = vpop.eup %561  ;;  %581 = vpow2.f32 %v494_v56  ;;  %v488_v1 = vmul.f32 -1.442695, %v192_v61  ;;  %v227_v49 = vadd.f32 %v788_v22, %v807_v63 }
  0xef   :  { %v564_v2 = vpop.eup %563  ;;  %v284_v3 = vadd.f32 1.0, %v562_v0  ;;  %583 = vpow2.f32 %v493_v58  ;;  %v487_v53 = vmul.f32 -1.442695, %v187_v44  ;;  %v496_v55 = vmul.f32 -1.442695, %v232_v47 }
  0xf0   :  { %v566_v4 = vpop.eup %565  ;;  %v292_v5 = vadd.f32 1.0, %v564_v2  ;;  %585 = vpow2.f32 %v488_v1  ;;  %v495_v57 = vmul.f32 -1.442695, %v227_v49 }
  0xf1   :  { %v568_v6 = vpop.eup %567  ;;  %587 = vrcp.f32 %v284_v3  ;;  %v283_v7 = vadd.f32 1.0, %v566_v4 }
  0xf2   :  { %v570_v8 = vpop.eup %569  ;;  %589 = vrcp.f32 %v292_v5  ;;  %v291_v9 = vadd.f32 1.0, %v568_v6 }
  0xf3   :  { %v572_v10 = vpop.eup %571  ;;  %591 = vrcp.f32 %v283_v7  ;;  %v286_v11 = vadd.f32 1.0, %v570_v8 }
  0xf4   :  { %v574_v12 = vpop.eup %573  ;;  %593 = vrcp.f32 %v291_v9  ;;  %v285_v13 = vadd.f32 1.0, %v572_v10 }
  0xf5   :  { %v576_v14 = vpop.eup %575  ;;  %595 = vrcp.f32 %v286_v11  ;;  %v294_v15 = vadd.f32 1.0, %v574_v12 }
  0xf6   :  { %v578_v16 = vpop.eup %577  ;;  %597 = vrcp.f32 %v285_v13  ;;  %v293_v17 = vadd.f32 1.0, %v576_v14 }
  0xf7   :  { %v580_v18 = vpop.eup %579  ;;  %599 = vrcp.f32 %v294_v15  ;;  %v288_v19 = vadd.f32 1.0, %v578_v16 }
  0xf8   :  { %v582_v20 = vpop.eup %581  ;;  %601 = vrcp.f32 %v293_v17  ;;  %v287_v21 = vadd.f32 1.0, %v580_v18 }
  0xf9   :  { %v584_v23 = vpop.eup %583  ;;  %603 = vrcp.f32 %v288_v19  ;;  %v296_v24 = vadd.f32 1.0, %v582_v20 }
  0xfa   :  { %v586_v25 = vpop.eup %585  ;;  %605 = vrcp.f32 %v287_v21  ;;  %v295_v26 = vadd.f32 1.0, %v584_v23 }
  0xfb   :  { %v588_v27 = vpop.eup %587  ;;  %607 = vrcp.f32 %v296_v24  ;;  %v290_v32 = vadd.f32 1.0, %v586_v25 }
  0xfc   :  { %v590_v28 = vpop.eup %589  ;;  %v333_v29 = vmul.f32 1.442695, %v588_v27  ;;  %609 = vrcp.f32 %v295_v26 }
  0xfd   :  { %v592_v30 = vpop.eup %591  ;;  %v349_v31 = vmul.f32 1.442695, %v590_v28 }
  0xfe   :  { %v594_v33 = vpop.eup %593  ;;  %611 = vpow2.f32 %v333_v29  ;;  %v331_v34 = vmul.f32 1.442695, %v592_v30 }
  0xff   :  { %v596_v35 = vpop.eup %595  ;;  %613 = vpow2.f32 %v349_v31  ;;  %v347_v36 = vmul.f32 1.442695, %v594_v33 }
 0x100   :  { %v598_v37 = vpop.eup %597  ;;  %615 = vpow2.f32 %v331_v34  ;;  %v337_v38 = vmul.f32 1.442695, %v596_v35 }
 0x101   :  { %v600_v39 = vpop.eup %599  ;;  %617 = vrcp.f32 %v290_v32  ;;  %v335_v43 = vmul.f32 1.442695, %v598_v37 }
 0x102   :  { %v602_v40 = vpop.eup %601  ;;  %619 = vpow2.f32 %v337_v38  ;;  %v353_v41 = vmul.f32 1.442695, %v600_v39 }
 0x103   :  { %v604_v42 = vpop.eup %603  ;;  %621 = vpow2.f32 %v347_v36  ;;  %v351_v46 = vmul.f32 1.442695, %v602_v40 }
 0x104   :  { %v606_v45 = vpop.eup %605  ;;  %623 = vpow2.f32 %v353_v41  ;;  %v341_v48 = vmul.f32 1.442695, %v604_v42 }
 0x105   :  { %v608_v50 = vpop.eup %607  ;;  %v339_v51 = vmul.f32 1.442695, %v606_v45  ;;  %625 = vpow2.f32 %v335_v43 }
 0x106   :  { %v610_v52 = vpop.eup %609  ;;  %627 = vpow2.f32 %v351_v46  ;;  %v357_v62 = vmul.f32 1.442695, %v608_v50 }
 0x107   :  { %629 = vpow2.f32 %v341_v48  ;;  %v355_v22 = vmul.f32 1.442695, %v610_v52 }
 0x108   :  { %v815_v54 = vpop.eup %611  ;;  %631 = vpow2.f32 %v339_v51 }
 0x109   :  { %v817_v56 = vpop.eup %613  ;;  %v367_v58 = vsel %vm363_vm1, %v815_v54, 0.0  ;;  %633 = vpow2.f32 %v487_v53 }
 0x10a   :  { %v821_v59 = vpop.eup %615  ;;  %v391_v60 = vsel %vm363_vm1, %v817_v56, 0.0  ;;  %368 = vadd.xlane.f32.xlu0 %v367_v58  ;;  %635 = vpow2.f32 %v496_v55 }
 0x10b   :  { %v618_v61 = vpop.eup %617  ;;  %392 = vadd.xlane.f32.xlu1 %v391_v60  ;;  %637 = vpow2.f32 %v495_v57  ;;  %v364_v2 = vsel %vm363_vm1, %v821_v59, 0.0 }
 0x10c   :  { %v825_v63 = vpop.eup %619  ;;  %639 = vpow2.f32 %v355_v22  ;;  %v345_v4 = vmul.f32 1.442695, %v618_v61 }
 0x10d   :  { %v827_v0 = vpop.eup %621  ;;  %v373_v1 = vsel %vm363_vm1, %v825_v63, 0.0  ;;  %641 = vpow2.f32 %v357_v62 }
 0x10e   :  { %v833_v3 = vpop.eup %623  ;;  %365 = vadd.xlane.f32.xlu0 %v364_v2  ;;  %v388_v7 = vsel %vm363_vm1, %v827_v0, 0.0  ;;  %643 = vpow2.f32 %v345_v4 }
 0x10f   :  { %374 = vadd.xlane.f32.xlu1 %v373_v1  ;;  %v397_v5 = vsel %vm363_vm1, %v833_v3, 0.0  ;;  %v837_v6 = vpop.eup %625 }
 0x110   :  { %v841_v8 = vpop.eup %627  ;;  %v370_v15 = vsel %vm363_vm1, %v837_v6, 0.0 }
 0x111   :  { %v843_v9 = vpop.eup %629  ;;  %v394_v12 = vsel %vm363_vm1, %v841_v8, 0.0 }
 0x112   :  { %389 = vadd.xlane.f32.xlu0 %v388_v7  ;;  %v845_v10 = vpop.eup %631  ;;  %v379_v21 = vsel %vm363_vm1, %v843_v9, 0.0 }
 0x113   :  { %398 = vadd.xlane.f32.xlu1 %v397_v5  ;;  %v634_v11 = vpop.eup %633  ;;  %v376_v18 = vsel %vm363_vm1, %v845_v10, 0.0 }
 0x114   :  { %v636_v13 = vpop.eup %635  ;;  %v289_v14 = vadd.f32 1.0, %v634_v11 }
 0x115   :  { %v638_v16 = vpop.eup %637  ;;  %v298_v17 = vadd.f32 1.0, %v636_v13 }
 0x116   :  { %395 = vadd.xlane.f32.xlu0 %v394_v12  ;;  %v853_v19 = vpop.eup %639  ;;  %645 = vrcp.f32 %v289_v14  ;;  %v297_v20 = vadd.f32 1.0, %v638_v16 }
 0x117   :  { %371 = vadd.xlane.f32.xlu1 %v370_v15  ;;  %v857_v23 = vpop.eup %641  ;;  %647 = vrcp.f32 %v298_v17  ;;  %v400_v24 = vsel %vm363_vm1, %v853_v19, 0.0 }
 0x118   :  { %649 = vrcp.f32 %v297_v20  ;;  %v403_v25 = vsel %vm363_vm1, %v857_v23, 0.0  ;;  %v863_v26 = vpop.eup %643 }
 0x119   :  { %v385_v27 = vsel %vm363_vm1, %v863_v26, 0.0 }
 0x11a   :  { %377 = vadd.xlane.f32.xlu0 %v376_v18 }
 0x11b   :  { %380 = vadd.xlane.f32.xlu1 %v379_v21 }
 0x11e   :  { %401 = vadd.xlane.f32.xlu0 %v400_v24 }
 0x11f   :  { %404 = vadd.xlane.f32.xlu1 %v403_v25 }
 0x120   :  { %v646_v28 = vpop.eup %645 }
 0x121   :  { %v648_v29 = vpop.eup %647  ;;  %v343_v30 = vmul.f32 1.442695, %v646_v28 }
 0x122   :  { %v650_v31 = vpop.eup %649  ;;  %v361_v32 = vmul.f32 1.442695, %v648_v29 }
 0x123   :  { %386 = vadd.xlane.f32.xlu1 %v385_v27  ;;  %651 = vpow2.f32 %v343_v30  ;;  %v359_v33 = vmul.f32 1.442695, %v650_v31 }
 0x124   :  { %653 = vpow2.f32 %v361_v32 }
 0x125   :  { %655 = vpow2.f32 %v359_v33 }
 0x12d   :  { %v867_v34 = vpop.eup %651 }
 0x12e   :  { %v869_v35 = vpop.eup %653  ;;  %v382_v36 = vsel %vm363_vm1, %v867_v34, 0.0 }
 0x12f   :  { %v873_v37 = vpop.eup %655  ;;  %383 = vadd.xlane.f32.xlu0 %v382_v36  ;;  %v409_v38 = vsel %vm363_vm1, %v869_v35, 0.0 }
 0x130   :  { %410 = vadd.xlane.f32.xlu1 %v409_v38  ;;  %v406_v39 = vsel %vm363_vm1, %v873_v37, 0.0 }
 0x133   :  { %407 = vadd.xlane.f32.xlu0 %v406_v39 }
 0x197   :  { %v369_v40 = vpop.xlane.xlu0 %368 }
 0x198   :  { %v393_v41 = vpop.xlane.xlu1 %392  ;;  %657 = vrcp.f32 %v369_v40 }
 0x199   :  { %659 = vrcp.f32 %v393_v41 }
 0x19b   :  { %v366_v42 = vpop.xlane.xlu0 %365 }
 0x19c   :  { %v375_v43 = vpop.xlane.xlu1 %374  ;;  %661 = vrcp.f32 %v366_v42 }
 0x19d   :  { %663 = vrcp.f32 %v375_v43 }
 0x19f   :  { %v390_v44 = vpop.xlane.xlu0 %389 }
 0x1a0   :  { %v399_v45 = vpop.xlane.xlu1 %398  ;;  %665 = vrcp.f32 %v390_v44 }
 0x1a1   :  { %667 = vrcp.f32 %v399_v45 }
 0x1a2   :  { %v658_v46 = vpop.eup %657 }
 0x1a3   :  { %v660_v47 = vpop.eup %659  ;;  %v415_v48 = vmul.f32 %v658_v46, %v815_v54  ;;  %v396_v49 = vpop.xlane.xlu0 %395 }
 0x1a4   :  { %v431_v50 = vmul.f32 %v660_v47, %v817_v56  ;;  %v372_v51 = vpop.xlane.xlu1 %371  ;;  %669 = vrcp.f32 %v396_v49 }
 0x1a5   :  { %445 = vst.msk [vmem:[%s962_s3 + $0x8] sm:$0xff] %vm363_vm1, %v415_v48  ;;  %671 = vrcp.f32 %v372_v51 }
 0x1a6   :  { %v662_v52 = vpop.eup %661  ;;  %453 = vst.msk [vmem:[%s962_s3 + $0x48] sm:$0xff] %vm363_vm1, %v431_v50 }
 0x1a7   :  { %v664_v53 = vpop.eup %663  ;;  %v413_v54 = vmul.f32 %v662_v52, %v821_v59  ;;  %v378_v55 = vpop.xlane.xlu0 %377 }
 0x1a8   :  { %v419_v56 = vmul.f32 %v664_v53, %v825_v63  ;;  %v381_v57 = vpop.xlane.xlu1 %380  ;;  %673 = vrcp.f32 %v378_v55 }
 0x1a9   :  { %444 = vst.msk [vmem:[%s962_s3] sm:$0xff] %vm363_vm1, %v413_v54  ;;  %675 = vrcp.f32 %v381_v57 }
 0x1aa   :  { %v666_v58 = vpop.eup %665  ;;  %447 = vst.msk [vmem:[%s962_s3 + $0x18] sm:$0xff] %vm363_vm1, %v419_v56 }
 0x1ab   :  { %v668_v22 = vpop.eup %667  ;;  %v429_v59 = vmul.f32 %v666_v58, %v827_v0  ;;  %v402_v60 = vpop.xlane.xlu0 %401 }
 0x1ac   :  { %v435_v61 = vmul.f32 %v668_v22, %v833_v3  ;;  %v405_v62 = vpop.xlane.xlu1 %404  ;;  %677 = vrcp.f32 %v402_v60 }
 0x1ad   :  { %452 = vst.msk [vmem:[%s962_s3 + $0x40] sm:$0xff] %vm363_vm1, %v429_v59  ;;  %679 = vrcp.f32 %v405_v62 }
 0x1ae   :  { %v670_v63 = vpop.eup %669  ;;  %455 = vst.msk [vmem:[%s962_s3 + $0x58] sm:$0xff] %vm363_vm1, %v435_v61 }
 0x1af   :  { %v672_v1 = vpop.eup %671  ;;  %v433_v0 = vmul.f32 %v670_v63, %v841_v8 }
 0x1b0   :  { %v417_v2 = vmul.f32 %v672_v1, %v837_v6  ;;  %v387_v3 = vpop.xlane.xlu1 %386 }
 0x1b1   :  { %454 = vst.msk [vmem:[%s962_s3 + $0x50] sm:$0xff] %vm363_vm1, %v433_v0  ;;  %681 = vrcp.f32 %v387_v3 }
 0x1b2   :  { %v674_v4 = vpop.eup %673  ;;  %446 = vst.msk [vmem:[%s962_s3 + $0x10] sm:$0xff] %vm363_vm1, %v417_v2 }
 0x1b3   :  { %v676_v5 = vpop.eup %675  ;;  %v421_v7 = vmul.f32 %v674_v4, %v845_v10 }
 0x1b4   :  { %v423_v8 = vmul.f32 %v676_v5, %v843_v9 }
 0x1b5   :  { %448 = vst.msk [vmem:[%s962_s3 + $0x20] sm:$0xff] %vm363_vm1, %v421_v7 }
 0x1b6   :  { %v678_v6 = vpop.eup %677  ;;  %449 = vst.msk [vmem:[%s962_s3 + $0x28] sm:$0xff] %vm363_vm1, %v423_v8 }
 0x1b7   :  { %v680_v11 = vpop.eup %679  ;;  %v437_v12 = vmul.f32 %v678_v6, %v853_v19 }
 0x1b8   :  { %v439_v13 = vmul.f32 %v680_v11, %v857_v23 }
 0x1b9   :  { %456 = vst.msk [vmem:[%s962_s3 + $0x60] sm:$0xff] %vm363_vm1, %v437_v12 }
 0x1ba   :  { %457 = vst.msk [vmem:[%s962_s3 + $0x68] sm:$0xff] %vm363_vm1, %v439_v13 }
 0x1bb   :  { %v682_v9 = vpop.eup %681 }
 0x1bc   :  { %v427_v10 = vmul.f32 %v682_v9, %v863_v26  ;;  %v384_v14 = vpop.xlane.xlu0 %383 }
 0x1bd   :  { %683 = vrcp.f32 %v384_v14  ;;  %v411_v15 = vpop.xlane.xlu1 %410 }
 0x1be   :  { %451 = vst.msk [vmem:[%s962_s3 + $0x38] sm:$0xff] %vm363_vm1, %v427_v10  ;;  %685 = vrcp.f32 %v411_v15 }
 0x1c0   :  { %v408_v16 = vpop.xlane.xlu0 %407 }
 0x1c1   :  { %687 = vrcp.f32 %v408_v16 }
 0x1c7   :  { %v684_v17 = vpop.eup %683 }
 0x1c8   :  { %v686_v18 = vpop.eup %685  ;;  %v425_v19 = vmul.f32 %v684_v17, %v867_v34 }
 0x1c9   :  { %v443_v20 = vmul.f32 %v686_v18, %v869_v35 }
 0x1ca   :  { %450 = vst.msk [vmem:[%s962_s3 + $0x30] sm:$0xff] %vm363_vm1, %v425_v19 }
 0x1cb   :  { %v688_v21 = vpop.eup %687  ;;  %459 = vst.msk [vmem:[%s962_s3 + $0x78] sm:$0xff] %vm363_vm1, %v443_v20 }
 0x1cc   :  { %v441_v23 = vmul.f32 %v688_v21, %v873_v37 }
 0x1ce   :  { %458 = vst.msk [vmem:[%s962_s3 + $0x70] sm:$0xff] %vm363_vm1, %v441_v23 }

</bundles_post_ra>
